<compile_context>
chip_gen: v7x
topology: tpu7x:2x2x1
jax: 0.10.0
libtpu: 0.0.40
codegen_flags: <defaults>
</compile_context>

<pallas_src>
import numpy as np
import jax
import jax.numpy as jnp
from jax.experimental import pallas as pl
from jax.experimental.pallas import tpu as pltpu


# ----------------------------------------------------------------------------
# Pallas kernel: k fused layers = (real matmul) + (complex diagonal multiply)
# ----------------------------------------------------------------------------
def _make_qsim_kernel(k):
    def kernel(ry_ref, diag_ref, out_ref):
        D = out_ref.shape[-1]

        # Initial state |0...0>  (amplitude 1 in lane 0, purely real).
        lane = jax.lax.broadcasted_iota(jnp.int32, (1, D), 1)
        re = jnp.where(lane == 0, 1.0, 0.0).astype(jnp.float32)
        im = jnp.zeros((1, D), jnp.float32)

        # k is a tiny static constant -> unroll in Python.
        for l in range(k):
            g = ry_ref[l]                           # (D, D) real fused RY layer (pre-transposed)
            new_re = jnp.dot(re, g, preferred_element_type=jnp.float32)
            if l == 0:
                # State is still purely real before the first layer: skip im matmul.
                new_im = jnp.zeros_like(new_re)
            else:
                new_im = jnp.dot(im, g, preferred_element_type=jnp.float32)

            d = diag_ref[l]                          # (2, D): row 0 = Re(diag), row 1 = Im(diag)
            dre = d[0:1, :]                          # (1, D)
            dim_ = d[1:2, :]                         # (1, D)

            # Complex elementwise multiply by the fused CRZ-ring diagonal (VPU).
            re = new_re * dre - new_im * dim_
            im = new_re * dim_ + new_im * dre

        # Probabilities written once, at the end.
        out_ref[...] = re * re + im * im

    return kernel


def run_generator2(ry_T, diag_ri):
    """ry_T: (k, D, D) f32 fused (transposed) real RY-layer matrices.
       diag_ri: (k, 2, D) f32 packed real/imag of the fused CRZ diagonals.
       Returns (D,) f32 probabilities."""
    k, D, _ = ry_T.shape
    out = pl.pallas_call(
        _make_qsim_kernel(k),
        out_shape=jax.ShapeDtypeStruct((1, D), jnp.float32),
        grid_spec=pltpu.PrefetchScalarGridSpec(
            num_scalar_prefetch=0,
            grid=(1,),
            in_specs=[pl.BlockSpec((k, D, D), lambda i: (0, 0, 0)),
                      pl.BlockSpec((k, 2, D), lambda i: (0, 0, 0))],
            out_specs=pl.BlockSpec((1, D), lambda i: (0, 0)),
        ),
        compiler_params=pltpu.CompilerParams(
            dimension_semantics=("arbitrary",)),
    )(ry_T, diag_ri)
    return out[0]


# ----------------------------------------------------------------------------
# Host-side glue: fuse each layer into one real matrix + one complex diagonal
# ----------------------------------------------------------------------------
def build_fused_layers(params_np, n_qubit):
    """params_np: list of k arrays of shape (2*n_qubit,).
       Returns (k, D, D) float64 real RY-layer matrices and (k, D) complex128
       fused CRZ-ring diagonals (wire 0 = MSB, PennyLane convention)."""
    D = 2 ** n_qubit
    ry_mats, diags = [], []
    for layer in params_np:
        # Fused RY layer: kron(RY_0, RY_1, ..., RY_{n-1})  (all real, commute)
        full = np.array([[1.0]], dtype=np.float64)
        for q in range(n_qubit):
            th = float(layer[q])
            ry = np.array([[np.cos(th / 2), -np.sin(th / 2)],
                           [np.sin(th / 2),  np.cos(th / 2)]], dtype=np.float64)
            full = np.kron(full, ry)
        ry_mats.append(full)

        # Fused CRZ ring: product of diagonal CRZ(theta; ctrl=q, tgt=(q+1)%n)
        diag = np.ones(D, dtype=np.complex128)
        for q in range(n_qubit):
            th = float(layer[n_qubit + q])
            ctrl, tgt = q, (q + 1) % n_qubit
            for b in range(D):
                cbit = (b >> (n_qubit - 1 - ctrl)) & 1
                tbit = (b >> (n_qubit - 1 - tgt)) & 1
                if cbit == 1:
                    phase = (-th / 2) if tbit == 0 else (th / 2)
                    diag[b] *= np.exp(1j * phase)
        diags.append(diag)
    return np.stack(ry_mats), np.stack(diags)


def build_gate_matrices_reference(params_np, n_qubit):
    """Per-gate dense embedding (reference only, used for validation)."""
    D = 2 ** n_qubit
    gates = []
    for layer in params_np:
        for q in range(n_qubit):
            th = float(layer[q])
            ry = np.array([[np.cos(th / 2), -np.sin(th / 2)],
                           [np.sin(th / 2),  np.cos(th / 2)]], dtype=np.complex128)
            mats = [np.eye(2, dtype=np.complex128) for _ in range(n_qubit)]
            mats[q] = ry
            full = mats[0]
            for m in mats[1:]:
                full = np.kron(full, m)
            gates.append(full)
        for q in range(n_qubit):
            th = float(layer[n_qubit + q])
            ctrl, tgt = q, (q + 1) % n_qubit
            diag = np.ones(D, dtype=np.complex128)
            for b in range(D):
                cbit = (b >> (n_qubit - 1 - ctrl)) & 1
                tbit = (b >> (n_qubit - 1 - tgt)) & 1
                if cbit == 1:
                    phase = (-th / 2) if tbit == 0 else (th / 2)
                    diag[b] = np.exp(1j * phase)
            gates.append(np.diag(diag))
    return np.stack(gates)


if __name__ == "__main__":
    n_qubit, k = 7, 2          # D = 2^7 = 128 basis states (lane-dense)
    D = 2 ** n_qubit
    # NOTE(scaling): per-layer gate block is k*D^2*4 B; at n_qubit >= 11 this
    # must be tiled over columns / vmem_limit_bytes raised (v7x has 64 MiB VMEM).

    # Deterministic parameter init: Normal(0, pi/8), shape (2*n_qubit,) per layer
    key = jax.random.PRNGKey(0)
    keys = jax.random.split(key, k)
    params = [np.asarray(jax.random.normal(keys[i], (2 * n_qubit,)),
                         dtype=np.float64) * (np.pi / 8)
              for i in range(k)]

    # Fused per-layer operators (host side, exact in float64/complex128)
    ry_mats, diags = build_fused_layers(params, n_qubit)        # (k,D,D), (k,D)
    ry_T = jnp.asarray(np.transpose(ry_mats, (0, 2, 1)), dtype=jnp.float32)
    diag_ri = jnp.asarray(np.stack([diags.real, diags.imag], axis=1),
                          dtype=jnp.float32)                     # (k, 2, D)

    probs = jax.block_until_ready(run_generator2(ry_T, diag_ri))   # (D,) f32

    # Pure-numpy reference: apply all 4*n_qubit gates individually
    gates_ref = build_gate_matrices_reference(params, n_qubit)
    state = np.zeros((D,), dtype=np.complex128)
    state[0] = 1.0
    for gmat in gates_ref:
        state = gmat @ state
    probs_ref = np.abs(state) ** 2

    assert probs.shape == (D,)
    assert np.allclose(np.asarray(probs), probs_ref, atol=1e-5), "mismatch vs reference"
    assert abs(float(jnp.sum(probs)) - 1.0) < 1e-4, "probs do not sum to 1"
    print("KERNEL_OK")
</pallas_src>

<mosaic_0001>
module attributes {stable_mosaic.version = 11 : i64} {
  func.func @kernel(%arg0: i32, %arg1: memref<2x128x128xf32, #tpu.memory_space<vmem>>, %arg2: memref<2x2x128xf32, #tpu.memory_space<vmem>>, %arg3: memref<1x128xf32, #tpu.memory_space<vmem>>) attributes {dimension_semantics = [#tpu.dimension_semantics<arbitrary>], iteration_bounds = array<i64: 1>, scalar_prefetch = 0 : i64, scratch_operands = 0 : i64, tpu.core_type = #tpu.core_type<tc>, window_params = [{pipeline_mode = #tpu.pipeline_mode<synchronous>, transform_indices = @transform_0, window_bounds = array<i64: 2, 128, 128>}, {pipeline_mode = #tpu.pipeline_mode<synchronous>, transform_indices = @transform_1, window_bounds = array<i64: 2, 2, 128>}, {pipeline_mode = #tpu.pipeline_mode<synchronous>, transform_indices = @transform_2, window_bounds = array<i64: 1, 128>}]} {
    %0 = tpu.iota {dimensions = array<i32: 1>} : vector<1x128xi32>
    %c0_i32 = arith.constant 0 : i32
    %1 = vector.broadcast %c0_i32 : i32 to vector<1x128xi32>
    %2 = arith.cmpi eq, %0, %1 : vector<1x128xi32>
    %cst = arith.constant 1.000000e+00 : f32
    %cst_0 = arith.constant 0.000000e+00 : f32
    %3 = vector.broadcast %cst : f32 to vector<1x128xf32>
    %4 = vector.broadcast %cst_0 : f32 to vector<1x128xf32>
    %5 = arith.select %2, %3, %4 : vector<1x128xi1>, vector<1x128xf32>
    %c0 = arith.constant 0 : index
    %c0_1 = arith.constant 0 : index
    %c0_2 = arith.constant 0 : index
    %6 = vector.load %arg1[%c0, %c0_1, %c0_2] : memref<2x128x128xf32, #tpu.memory_space<vmem>>, vector<1x128x128xf32>
    %7 = vector.shape_cast %6 : vector<1x128x128xf32> to vector<128x128xf32>
    %cst_3 = arith.constant dense<0.000000e+00> : vector<1x128xf32>
    %8 = tpu.matmul %5, %7, %cst_3 {dimension_numbers = #tpu.dot_dimension_numbers<[1], [0], [0], [1], [0, 0, 1, 1], [], []>} : vector<1x128xf32>, vector<128x128xf32>, vector<1x128xf32> -> vector<1x128xf32>
    %cst_4 = arith.constant 0.000000e+00 : f32
    %9 = vector.broadcast %cst_4 : f32 to vector<1x128xf32>
    %c0_5 = arith.constant 0 : index
    %c0_6 = arith.constant 0 : index
    %c0_7 = arith.constant 0 : index
    %10 = vector.load %arg2[%c0_5, %c0_6, %c0_7] : memref<2x2x128xf32, #tpu.memory_space<vmem>>, vector<1x2x128xf32>
    %11 = vector.shape_cast %10 : vector<1x2x128xf32> to vector<2x128xf32>
    %12 = vector.extract_strided_slice %11 {offsets = [0, 0], sizes = [1, 128], strides = [1, 1]} : vector<2x128xf32> to vector<1x128xf32>
    %13 = vector.extract_strided_slice %11 {offsets = [1, 0], sizes = [1, 128], strides = [1, 1]} : vector<2x128xf32> to vector<1x128xf32>
    %14 = arith.mulf %8, %12 : vector<1x128xf32>
    %15 = arith.mulf %9, %13 : vector<1x128xf32>
    %16 = arith.subf %14, %15 : vector<1x128xf32>
    %17 = arith.mulf %8, %13 : vector<1x128xf32>
    %18 = arith.mulf %9, %12 : vector<1x128xf32>
    %19 = arith.addf %17, %18 : vector<1x128xf32>
    %c1 = arith.constant 1 : index
    %c0_8 = arith.constant 0 : index
    %c0_9 = arith.constant 0 : index
    %20 = vector.load %arg1[%c1, %c0_8, %c0_9] : memref<2x128x128xf32, #tpu.memory_space<vmem>>, vector<1x128x128xf32>
    %21 = vector.shape_cast %20 : vector<1x128x128xf32> to vector<128x128xf32>
    %cst_10 = arith.constant dense<0.000000e+00> : vector<1x128xf32>
    %22 = tpu.matmul %16, %21, %cst_10 {dimension_numbers = #tpu.dot_dimension_numbers<[1], [0], [0], [1], [0, 0, 1, 1], [], []>} : vector<1x128xf32>, vector<128x128xf32>, vector<1x128xf32> -> vector<1x128xf32>
    %cst_11 = arith.constant dense<0.000000e+00> : vector<1x128xf32>
    %23 = tpu.matmul %19, %21, %cst_11 {dimension_numbers = #tpu.dot_dimension_numbers<[1], [0], [0], [1], [0, 0, 1, 1], [], []>} : vector<1x128xf32>, vector<128x128xf32>, vector<1x128xf32> -> vector<1x128xf32>
    %c1_12 = arith.constant 1 : index
    %c0_13 = arith.constant 0 : index
    %c0_14 = arith.constant 0 : index
    %24 = vector.load %arg2[%c1_12, %c0_13, %c0_14] : memref<2x2x128xf32, #tpu.memory_space<vmem>>, vector<1x2x128xf32>
    %25 = vector.shape_cast %24 : vector<1x2x128xf32> to vector<2x128xf32>
    %26 = vector.extract_strided_slice %25 {offsets = [0, 0], sizes = [1, 128], strides = [1, 1]} : vector<2x128xf32> to vector<1x128xf32>
    %27 = vector.extract_strided_slice %25 {offsets = [1, 0], sizes = [1, 128], strides = [1, 1]} : vector<2x128xf32> to vector<1x128xf32>
    %28 = arith.mulf %22, %26 : vector<1x128xf32>
    %29 = arith.mulf %23, %27 : vector<1x128xf32>
    %30 = arith.subf %28, %29 : vector<1x128xf32>
    %31 = arith.mulf %22, %27 : vector<1x128xf32>
    %32 = arith.mulf %23, %26 : vector<1x128xf32>
    %33 = arith.addf %31, %32 : vector<1x128xf32>
    %34 = arith.mulf %30, %30 : vector<1x128xf32>
    %35 = arith.mulf %33, %33 : vector<1x128xf32>
    %36 = arith.addf %34, %35 : vector<1x128xf32>
    %c0_15 = arith.constant 0 : index
    %c0_16 = arith.constant 0 : index
    %37 = vector.load %arg3[%c0_15, %c0_16] : memref<1x128xf32, #tpu.memory_space<vmem>>, vector<1x128xf32>
    tpu.vector_store %arg3[%c0_15, %c0_16], %36 {strides = array<i32>} : memref<1x128xf32, #tpu.memory_space<vmem>>, vector<1x128xf32>,
    return
  }
  func.func @transform_0(%arg0: i32) -> (i32, i32, i32) {
    %c0_i32 = arith.constant 0 : i32
    %c0_i32_0 = arith.constant 0 : i32
    %c0_i32_1 = arith.constant 0 : i32
    %c0_i32_2 = arith.constant 0 : i32
    return %c0_i32, %c0_i32_0, %c0_i32_1 : i32, i32, i32
  }
  func.func @transform_1(%arg0: i32) -> (i32, i32, i32) {
    %c0_i32 = arith.constant 0 : i32
    %c0_i32_0 = arith.constant 0 : i32
    %c0_i32_1 = arith.constant 0 : i32
    %c0_i32_2 = arith.constant 0 : i32
    return %c0_i32, %c0_i32_0, %c0_i32_1 : i32, i32, i32
  }
  func.func @transform_2(%arg0: i32) -> (i32, i32) {
    %c0_i32 = arith.constant 0 : i32
    %c0_i32_0 = arith.constant 0 : i32
    %c0_i32_1 = arith.constant 0 : i32
    return %c0_i32, %c0_i32_0 : i32, i32
  }
}

</mosaic_0001>

<bundles_post_ra>
// kernel: tpu_custom_call.1
= control target key start
LH: loop header
LB: loop body
LE: loop exit
PB: predicated region body
PF: predicated region fallthrough
CT: control target
= control target key end

     0   :  { %7 = vsyncpa [#allocation3], 0  ;;  %s738_s0 = inlined_call_operand.hbm [shape: f32[2,128,128], index: 0, kind: input, shape index: {}]   ;;  %s739_s1 = inlined_call_operand.hbm [shape: f32[2,2,128], index: 1, kind: input, shape index: {}]   ;;  %s740_s2 = inlined_call_operand.hbm [shape: f32[1,128], index: 2, kind: output, shape index: {}]  }
   0x1   :  { %8 = vsyncpa [#allocation6], 0 }
   0x2   :  { %9 = vsyncpa [#allocation4], 0  ;;  %s642_s9 = smov [#allocation2]   ;;  %s570_s13 = scalar_lea.hbm %s738_s0, 4096 }
   0x3   :  { %s15_s10 = sshll.u32 %s642_s9, 4  ;;  %p571_p0 = scmp.ne.s32.totalorder %s738_s0, %s570_s13  ;;  %s16_s10 = int_to_ptr.vmem [resolvable:$true] %s15_s10 }
   0x4   :  { %p574_p1 = scmp.lt.u32.totalorder %s570_s13, %s738_s0 }
   0x6   :  { %p576_p2 = pnand %p574_p1, %p571_p0 }
   0x8   :  { %579 = shalt.err (!%p576_p2)
}
   0x9   :  { %s580_s18 = scalar_lea.vmem %s16_s10, 4096  ;;  %p585_p4 = scmp.lt.s32.totalorder %s16_s10, %s16_s10 }
   0xa   :  { %p581_p3 = scmp.ne.s32.totalorder %s16_s10, %s580_s18  ;;  %p586_p5 = scmp.lt.s32.totalorder %s580_s18, %s580_s18 }
   0xc   :  { %p587_p6 = por %p586_p5, %p585_p4 }
   0xe   :  { %p588_p7 = pnand %p587_p6, %p581_p3 }
  0x10   :  { %591 = shalt.err (!%p588_p7)
}
  0x11   :  { %s643_s19 = smov 128   ;;  %s644_s20 = smov 8  }
  0x12   :  { %21 = dma.hbm_to_vmem [thread:$0]  %s738_s0, 4096, %s16_s10, [#allocation3], %s643_s19, %s643_s19, %s644_s20  }
  0x13   :  { %s645_s23 = smov [#allocation5]   ;;  %s592_s27 = scalar_lea.hbm %s739_s1, 64 }
  0x14   :  { %s27_s24 = sshll.u32 %s645_s23, 4  ;;  %p593_p8 = scmp.ne.s32.totalorder %s739_s1, %s592_s27  ;;  %s28_s24 = int_to_ptr.vmem [resolvable:$true] %s27_s24 }
  0x15   :  { %p596_p9 = scmp.lt.u32.totalorder %s592_s27, %s739_s1 }
  0x17   :  { %p598_p10 = pnand %p596_p9, %p593_p8 }
  0x19   :  { %601 = shalt.err (!%p598_p10)
}
  0x1a   :  { %s602_s4 = scalar_lea.vmem %s28_s24, 64  ;;  %p607_p12 = scmp.lt.s32.totalorder %s28_s24, %s28_s24 }
  0x1b   :  { %p603_p11 = scmp.ne.s32.totalorder %s28_s24, %s602_s4  ;;  %p608_p13 = scmp.lt.s32.totalorder %s602_s4, %s602_s4 }
  0x1d   :  { %p609_p0 = por %p608_p13, %p607_p12 }
  0x1f   :  { %p610_p1 = pnand %p609_p0, %p603_p11 }
  0x21   :  { %613 = shalt.err (!%p610_p1)
}
  0x22   :  { %s646_s0 = smov 32   ;;  %s647_s5 = smov 2  }
  0x23   :  { %33 = dma.hbm_to_vmem [thread:$0]  %s739_s1, 64, %s28_s24, [#allocation6], %s646_s0, %s646_s0, %s647_s5  }
  0x24   :  { %636 = dma.done.wait [#allocation3], 4096  }
  0x25   :  { %637 = vsyncadd [#allocation3], 4294963200 }
  0x26   :  { %638 = dma.done.wait [#allocation6], 64  }
  0x27   :  { %639 = vsyncadd [#allocation6], 4294967232  ;;  %v648_v0 = vmov 0.0|0.0   ;;  %vm649_vm0 = vmmov 0   ;;  %v650_v1 = vmov 0.0   ;;  %v44_v2 = vld [vmem:[#allocation2] sm:$0xff]  ;;  %v40_v40 = vlaneseq }
  0x28   :  { %487 = vmatprep.subr.bf16.mxu0 %v648_v0  ;;  %414 = vmatprep.mubr.msk.f32.mxu0 %vm649_vm0, %v650_v1  ;;  %v45_v3 = vld [vmem:[#allocation2 + $0x8] sm:$0xff]  ;;  %v46_v4 = vld [vmem:[#allocation2 + $0x10] sm:$0xff]  ;;  %v47_v6 = vld [vmem:[#allocation2 + $0x18] sm:$0xff]  ;;  %v651_v49 = vmov 1.0   ;;  %s652_s1 = smov [#allocation7]  }
  0x29   :  { %511 = vmatprep.subr.bf16.mxu1 %v648_v0  ;;  %449 = vmatprep.mubr.msk.f32.mxu1 %vm649_vm0, %v650_v1  ;;  %v488_v5 = vpack.c.bf16 %v45_v3, %v44_v2  ;;  %v491_v7 = vpack.c.bf16 %v47_v6, %v46_v4  ;;  %v48_v8 = vld [vmem:[#allocation2 + $0x20] sm:$0xff]  ;;  %v49_v9 = vld [vmem:[#allocation2 + $0x28] sm:$0xff]  ;;  %v145_v13 = vld [vmem:[#allocation2 + $0x90] sm:$0xff]  ;;  %v41_v47 = vand.u32 127, %v40_v40  ;;  %s320_s8 = sshll.u32 %s652_s1, 4  ;;  %s321_s8 = int_to_ptr.vmem [resolvable:$true] %s320_s8 }
  0x2a   :  { %v143_v10 = vld [vmem:[#allocation2 + $0x80] sm:$0xff]  ;;  %v144_v11 = vld [vmem:[#allocation2 + $0x88] sm:$0xff]  ;;  %v146_v14 = vld [vmem:[#allocation2 + $0x98] sm:$0xff]  ;;  %v494_v15 = vpack.c.bf16 %v49_v9, %v48_v8  ;;  %s614_s9 = scalar_lea.vmem %s321_s8, 16  ;;  %s618_s10 = scalar_lea.vmem %s321_s8, 32 }
  0x2b   :  { %489 = vmatpush3.bf16.msra.mxu0 %v488_v5  ;;  %v699_v12 = vpack.c.bf16 %v144_v11, %v143_v10  ;;  %v50_v16 = vld [vmem:[#allocation2 + $0x30] sm:$0xff]  ;;  %v51_v17 = vld [vmem:[#allocation2 + $0x38] sm:$0xff]  ;;  %v515_v18 = vpack.c.bf16 %v146_v14, %v145_v13  ;;  %v147_v19 = vld [vmem:[#allocation2 + $0xa0] sm:$0xff]  ;;  %vm42_vm1 = vcmp.eq.s32.totalorder %v41_v47, 0  ;;  %p615_p2 = scmp.ne.s32.totalorder %s321_s8, %s614_s9  ;;  %p619_p3 = scmp.lt.s32.totalorder %s321_s8, %s321_s8 }
  0x2c   :  { %490 = vmatprep.subr.bf16.mxu0 %v648_v0  ;;  %v148_v20 = vld [vmem:[#allocation2 + $0xa8] sm:$0xff]  ;;  %v497_v21 = vpack.c.bf16 %v51_v17, %v50_v16  ;;  %v52_v22 = vld [vmem:[#allocation2 + $0x40] sm:$0xff]  ;;  %v149_v25 = vld [vmem:[#allocation2 + $0xb0] sm:$0xff]  ;;  %p620_p4 = scmp.lt.s32.totalorder %s618_s10, %s614_s9 }
  0x2d   :  { %513 = vmatpush3.bf16.msra.mxu1 %v699_v12  ;;  %v53_v23 = vld [vmem:[#allocation2 + $0x48] sm:$0xff]  ;;  %v518_v24 = vpack.c.bf16 %v148_v20, %v147_v19  ;;  %v150_v26 = vld [vmem:[#allocation2 + $0xb8] sm:$0xff]  ;;  %v54_v28 = vld [vmem:[#allocation2 + $0x50] sm:$0xff] }
  0x2e   :  { %514 = vmatprep.subr.bf16.mxu1 %v648_v0  ;;  %v500_v27 = vpack.c.bf16 %v53_v23, %v52_v22  ;;  %v55_v29 = vld [vmem:[#allocation2 + $0x58] sm:$0xff]  ;;  %v521_v30 = vpack.c.bf16 %v150_v26, %v149_v25  ;;  %v151_v31 = vld [vmem:[#allocation2 + $0xc0] sm:$0xff]  ;;  %v152_v32 = vld [vmem:[#allocation2 + $0xc8] sm:$0xff]  ;;  %p621_p5 = por %p620_p4, %p619_p3 }
  0x2f   :  { %492 = vmatpush3.bf16.msra.mxu0 %v491_v7  ;;  %v503_v33 = vpack.c.bf16 %v55_v29, %v54_v28  ;;  %v56_v34 = vld [vmem:[#allocation2 + $0x60] sm:$0xff]  ;;  %v57_v35 = vld [vmem:[#allocation2 + $0x68] sm:$0xff]  ;;  %v524_v36 = vpack.c.bf16 %v152_v32, %v151_v31  ;;  %v153_v37 = vld [vmem:[#allocation2 + $0xd0] sm:$0xff] }
  0x30   :  { %493 = vmatprep.subr.bf16.mxu0 %v648_v0  ;;  %v154_v38 = vld [vmem:[#allocation2 + $0xd8] sm:$0xff]  ;;  %v506_v39 = vpack.c.bf16 %v57_v35, %v56_v34  ;;  %v58_v41 = vld [vmem:[#allocation2 + $0x70] sm:$0xff]  ;;  %v155_v44 = vld [vmem:[#allocation2 + $0xe0] sm:$0xff]  ;;  %p622_p6 = pnand %p621_p5, %p615_p2 }
  0x31   :  { %516 = vmatpush3.bf16.msra.mxu1 %v515_v18  ;;  %v59_v42 = vld [vmem:[#allocation2 + $0x78] sm:$0xff]  ;;  %v527_v43 = vpack.c.bf16 %v154_v38, %v153_v37  ;;  %v156_v45 = vld [vmem:[#allocation2 + $0xe8] sm:$0xff]  ;;  %v157_v50 = vld [vmem:[#allocation2 + $0xf0] sm:$0xff] }
  0x32   :  { %517 = vmatprep.subr.bf16.mxu1 %v648_v0  ;;  %v509_v46 = vpack.c.bf16 %v59_v42, %v58_v41  ;;  %v530_v48 = vpack.c.bf16 %v156_v45, %v155_v44  ;;  %v158_v51 = vld [vmem:[#allocation2 + $0xf8] sm:$0xff]  ;;  %v130_v53 = vld [vmem:[#allocation5] sm:$0x3]  ;;  %v300_v63 = vld [vmem:[#allocation5 + $0x2] sm:$0x3] }
  0x33   :  { %495 = vmatpush3.bf16.msra.mxu0 %v494_v15  ;;  %v533_v52 = vpack.c.bf16 %v158_v51, %v157_v50  ;;  %v132_v54 = vmul.f32 0.0, %v130_v53  ;;  %v138_v55 = vrot.slane %v130_v53, 1 }
  0x34   :  { %496 = vmatprep.subr.bf16.mxu0 %v648_v0 }
  0x35   :  { %519 = vmatpush3.bf16.msra.mxu1 %v518_v24  ;;  %v134_v56 = vrot.slane %v132_v54, 1 }
  0x36   :  { %520 = vmatprep.subr.bf16.mxu1 %v648_v0 }
  0x37   :  { %498 = vmatpush3.bf16.msra.mxu0 %v497_v21 }
  0x38   :  { %499 = vmatprep.subr.bf16.mxu0 %v648_v0 }
  0x39   :  { %522 = vmatpush3.bf16.msra.mxu1 %v521_v30 }
  0x3a   :  { %523 = vmatprep.subr.bf16.mxu1 %v648_v0 }
  0x3b   :  { %501 = vmatpush3.bf16.msra.mxu0 %v500_v27 }
  0x3c   :  { %502 = vmatprep.subr.bf16.mxu0 %v648_v0 }
  0x3d   :  { %525 = vmatpush3.bf16.msra.mxu1 %v524_v36 }
  0x3e   :  { %526 = vmatprep.subr.bf16.mxu1 %v648_v0 }
  0x3f   :  { %504 = vmatpush3.bf16.msra.mxu0 %v503_v33 }
  0x40   :  { %505 = vmatprep.subr.bf16.mxu0 %v648_v0 }
  0x41   :  { %528 = vmatpush3.bf16.msra.mxu1 %v527_v43 }
  0x42   :  { %529 = vmatprep.subr.bf16.mxu1 %v648_v0 }
  0x43   :  { %507 = vmatpush3.bf16.msra.mxu0 %v506_v39 }
  0x44   :  { %508 = vmatprep.subr.bf16.mxu0 %v648_v0 }
  0x45   :  { %531 = vmatpush3.bf16.msra.mxu1 %v530_v48 }
  0x46   :  { %532 = vmatprep.subr.bf16.mxu1 %v648_v0 }
  0x47   :  { %510 = vmatpush3.bf16.msra.mxu0 %v509_v46 }
  0x48   :  { %535 = vmatprep.subr.bf16.mxu0 %v648_v0 }
  0x49   :  { %534 = vmatpush3.bf16.msra.mxu1 %v533_v52 }
  0x4a   :  { %415 = vmatmul.mubr.msk.f32.vlgmr.msra.gmra.mrb[0].mxu0 %vm42_vm1, %v651_v49 }
  0x4b   :  { %537 = vmatpush3.bf16.msra.mxu0 %v699_v12  ;;  %484 = vmatprep.mubr.msk.f32.mxu0 %vm649_vm0, %v650_v1  ;;  %v303_v1 = vrot.slane %v300_v63, 1 }
  0x4c   :  { %538 = vmatprep.subr.bf16.mxu0 %v648_v0 }
  0x4f   :  { %540 = vmatpush3.bf16.msra.mxu0 %v515_v18 }
  0x50   :  { %541 = vmatprep.subr.bf16.mxu0 %v648_v0 }
  0x53   :  { %543 = vmatpush3.bf16.msra.mxu0 %v518_v24 }
  0x54   :  { %544 = vmatprep.subr.bf16.mxu0 %v648_v0 }
  0x57   :  { %546 = vmatpush3.bf16.msra.mxu0 %v521_v30 }
  0x58   :  { %547 = vmatprep.subr.bf16.mxu0 %v648_v0 }
  0x5b   :  { %549 = vmatpush3.bf16.msra.mxu0 %v524_v36 }
  0x5c   :  { %550 = vmatprep.subr.bf16.mxu0 %v648_v0 }
  0x5f   :  { %552 = vmatpush3.bf16.msra.mxu0 %v527_v43 }
  0x60   :  { %553 = vmatprep.subr.bf16.mxu0 %v648_v0 }
  0x63   :  { %555 = vmatpush3.bf16.msra.mxu0 %v530_v48 }
  0x64   :  { %556 = vmatprep.subr.bf16.mxu0 %v648_v0 }
  0x67   :  { %558 = vmatpush3.bf16.msra.mxu0 %v533_v52 }
 0x11d   :  { %v126_v57 = vpop.f32.mrb[0].mxu0 }
 0x11e   :  { %v131_v58 = vmul.f32 %v130_v53, %v126_v57  ;;  %v140_v59 = vmul.f32 %v138_v55, %v126_v57  ;;  %v416_v60 = vpop.f32.mrb[1].mxu0 }
 0x120   :  { %v136_v61 = vsub.f32 %v131_v58, %v134_v56  ;;  %v141_v62 = vadd.f32 %v140_v59, %v132_v54 }
 0x122   :  { %450 = vmatmul.mubr.f32.vlgmr.msra.gmra.mrb[0].mxu1 %v136_v61  ;;  %485 = vmatmul.mubr.f32.vlgmr.msra.gmra.mrb[2].mxu0 %v141_v62 }
 0x1f5   :  { %v225_v0 = vpop.f32.mrb[0].mxu1  ;;  %v295_v2 = vpop.f32.mrb[2].mxu0 }
 0x1f6   :  { %v301_v3 = vmul.f32 %v300_v63, %v225_v0  ;;  %v307_v4 = vmul.f32 %v303_v1, %v225_v0  ;;  %v305_v5 = vmul.f32 %v303_v1, %v295_v2  ;;  %v308_v6 = vmul.f32 %v300_v63, %v295_v2  ;;  %v451_v7 = vpop.f32.mrb[1].mxu1  ;;  %v486_v8 = vpop.f32.mrb[3].mxu0 }
 0x1f8   :  { %v306_v9 = vsub.f32 %v301_v3, %v305_v5  ;;  %v309_v10 = vadd.f32 %v308_v6, %v307_v4 }
 0x1fa   :  { %v310_v11 = vmul.f32 %v306_v9, %v306_v9  ;;  %v311_v12 = vmul.f32 %v309_v10, %v309_v10 }
 0x1fc   :  { %v312_v13 = vadd.f32 %v311_v12, %v310_v11 }
 0x1fe   :  { %313 = vst [vmem:[#allocation7] sm:$0x1] %v312_v13 }
 0x1ff   :  { %625 = shalt.err (!%p622_p6)
}
 0x200   :  { %s626_s13 = scalar_lea.hbm %s740_s2, 16 }
 0x201   :  { %p627_p7 = scmp.ne.s32.totalorder %s740_s2, %s626_s13  ;;  %p630_p8 = scmp.lt.u32.totalorder %s626_s13, %s740_s2 }
 0x203   :  { %p632_p9 = pnand %p630_p8, %p627_p7 }
 0x205   :  { %635 = shalt.err (!%p632_p9)
}
 0x206   :  { %323 = dma.vmem_to_hbm [thread:$0]  %s321_s8, 16, %s740_s2, [#allocation4]  }
 0x207   :  { %640 = dma.done.wait [#allocation4], 16  }
 0x208   :  { %641 = vsyncadd [#allocation4], 4294967280 }
 0x209   :  { %327 = vsyncpa [#allocation3], 1 }
 0x20a   :  { %328 = vsyncpa [#allocation6], 1 }
 0x20b   :  { %329 = vsyncpa [#allocation4], 1 }

</bundles_post_ra>
